<compile_context>
chip_gen: v6e
topology: v6e:2x2x1
jax: 0.10.0
libtpu: 0.0.40
codegen_flags: <defaults>
</compile_context>

<pallas_src>
import math
import functools
import numpy as np

import jax
import jax.numpy as jnp
from jax import lax
from jax.experimental import pallas as pl
from jax.experimental.pallas import tpu as pltpu

EPS_BN = 1e-5          # nn.BatchNorm1d default eps
EPS_L2 = 1e-8          # l2norm eps
VMEM_LIMIT = 32 * 1024 * 1024   # conservative scoped-VMEM cap (fits v5e/v6e/v7x)


def _vmem():
    # whole-array VMEM block (used for the small GPO tensors)
    return pl.BlockSpec(memory_space=pltpu.MemorySpace.VMEM)


def _pick_row_tile(n_rows, target):
    """Largest row tile <= target that divides n_rows and is a multiple of 16
    (bf16 sublane packing), falling back to the full row count."""
    if n_rows <= target:
        return n_rows
    t = (target // 16) * 16
    while t >= 16:
        if n_rows % t == 0:
            return t
        t -= 16
    return n_rows


def _pick_divisor(n, target):
    """Largest divisor of n that is <= target."""
    t = min(n, target)
    while t > 1:
        if n % t == 0:
            return t
        t -= 1
    return 1


def _bn_scale_shift(stats, n_rows, gamma, beta):
    """Fold training-mode BatchNorm (batch stats, biased var) into scale/shift."""
    mu = stats[0:1] / n_rows
    var = jnp.maximum(stats[1:2] / n_rows - mu * mu, 0.0)
    scale = gamma * lax.rsqrt(var + EPS_BN)          # rsqrt -> EUP
    shift = beta - mu * scale
    return scale, shift


# --------------------------------------------------------------------------
# Kernel A1: [f | h_pre] = x @ [Wfc | W1] + [bfc | b1]   (bf16 MXU, f32 accum)
#            + running column sum / sum-of-squares of h_pre (global BN1 stats).
#            f / h_pre are stored as bf16 intermediates (halves HBM traffic on
#            this memory-bound path); the stats are accumulated from the f32
#            accumulator values, so BN1 statistics stay exact.
# --------------------------------------------------------------------------
def feat_proj_kernel(x_ref, wcat_ref, bcat_ref, f_ref, h_ref, stats_ref, *, embed):
    x = x_ref[...].astype(jnp.bfloat16)
    y = jnp.dot(x, wcat_ref[...], preferred_element_type=jnp.float32) + bcat_ref[...]
    f = y[:, :embed]
    h = y[:, embed:]
    f_ref[...] = f.astype(f_ref.dtype)
    h_ref[...] = h.astype(h_ref.dtype)

    @pl.when(pl.program_id(0) == 0)
    def _():
        stats_ref[...] = jnp.zeros_like(stats_ref)

    stats_ref[pl.ds(0, 1), :] += jnp.sum(h, axis=0, keepdims=True)
    stats_ref[pl.ds(1, 1), :] += jnp.sum(h * h, axis=0, keepdims=True)


# --------------------------------------------------------------------------
# Kernel A2: m_pre = relu(BN1(h_pre)) @ W2 + b2   + global BN2 stats
# --------------------------------------------------------------------------
def mlp2_kernel(h_ref, s1_ref, t1_ref, w2_ref, b2_ref, m_ref, stats_ref):
    h = h_ref[...].astype(jnp.float32)
    h = jnp.maximum(h * s1_ref[...] + t1_ref[...], 0.0)
    m = jnp.dot(h.astype(jnp.bfloat16), w2_ref[...],
                preferred_element_type=jnp.float32) + b2_ref[...]
    m_ref[...] = m.astype(m_ref.dtype)

    @pl.when(pl.program_id(0) == 0)
    def _():
        stats_ref[...] = jnp.zeros_like(stats_ref)

    stats_ref[pl.ds(0, 1), :] += jnp.sum(m, axis=0, keepdims=True)
    stats_ref[pl.ds(1, 1), :] += jnp.sum(m * m, axis=0, keepdims=True)


# --------------------------------------------------------------------------
# Kernel A3: features = f + BN2(m_pre)   (elementwise epilogue, f32 output)
# --------------------------------------------------------------------------
def bn_add_kernel(f_ref, m_ref, s2_ref, t2_ref, out_ref):
    f = f_ref[...].astype(jnp.float32)
    m = m_ref[...].astype(jnp.float32)
    out_ref[...] = f + m * s2_ref[...] + t2_ref[...]


def fused_fc_mlp(x2d, p, row_tile=256):
    """fc(x) + MLP(x) with row-tiled grids, resident bf16 weights, bf16
    intermediates and a two-pass (tile-exact) training-mode BatchNorm."""
    BN, D = x2d.shape
    E = p["wfc"].shape[1]
    hid = p["w1"].shape[1]
    tm = _pick_row_tile(BN, row_tile)
    grid = (BN // tm,)

    # Fuse the two matmuls that share the LHS x; weights cast to bf16 once.
    wcat = jnp.concatenate([p["wfc"], p["w1"]], axis=1).astype(jnp.bfloat16)
    bcat = jnp.concatenate([p["bfc"], p["b1"]], axis=1).astype(jnp.float32)
    w2 = p["w2"].astype(jnp.bfloat16)

    f_all, h_all, stats1 = pl.pallas_call(
        functools.partial(feat_proj_kernel, embed=E),
        grid=grid,
        in_specs=[pl.BlockSpec((tm, D), lambda i: (i, 0)),
                  pl.BlockSpec((D, E + hid), lambda i: (0, 0)),   # resident
                  pl.BlockSpec((1, E + hid), lambda i: (0, 0))],  # resident
        out_specs=(pl.BlockSpec((tm, E), lambda i: (i, 0)),
                   pl.BlockSpec((tm, hid), lambda i: (i, 0)),
                   pl.BlockSpec((2, hid), lambda i: (0, 0))),     # accumulator
        out_shape=(jax.ShapeDtypeStruct((BN, E), jnp.bfloat16),
                   jax.ShapeDtypeStruct((BN, hid), jnp.bfloat16),
                   jax.ShapeDtypeStruct((2, hid), jnp.float32)),
        compiler_params=pltpu.CompilerParams(
            dimension_semantics=("arbitrary",),   # stats accumulate over this axis
            vmem_limit_bytes=VMEM_LIMIT),
    )(x2d, wcat, bcat)

    s1, t1 = _bn_scale_shift(stats1, BN, p["g1"], p["be1"])

    m_all, stats2 = pl.pallas_call(
        mlp2_kernel,
        grid=grid,
        in_specs=[pl.BlockSpec((tm, hid), lambda i: (i, 0)),
                  pl.BlockSpec((1, hid), lambda i: (0, 0)),
                  pl.BlockSpec((1, hid), lambda i: (0, 0)),
                  pl.BlockSpec((hid, E), lambda i: (0, 0)),       # resident
                  pl.BlockSpec((1, E), lambda i: (0, 0))],
        out_specs=(pl.BlockSpec((tm, E), lambda i: (i, 0)),
                   pl.BlockSpec((2, E), lambda i: (0, 0))),       # accumulator
        out_shape=(jax.ShapeDtypeStruct((BN, E), jnp.bfloat16),
                   jax.ShapeDtypeStruct((2, E), jnp.float32)),
        compiler_params=pltpu.CompilerParams(
            dimension_semantics=("arbitrary",),
            vmem_limit_bytes=VMEM_LIMIT),
    )(h_all, s1, t1, w2, p["b2"])

    s2, t2 = _bn_scale_shift(stats2, BN, p["g2"], p["be2"])

    feats = pl.pallas_call(
        bn_add_kernel,
        grid=grid,
        in_specs=[pl.BlockSpec((tm, E), lambda i: (i, 0)),
                  pl.BlockSpec((tm, E), lambda i: (i, 0)),
                  pl.BlockSpec((1, E), lambda i: (0, 0)),
                  pl.BlockSpec((1, E), lambda i: (0, 0))],
        out_specs=pl.BlockSpec((tm, E), lambda i: (i, 0)),
        out_shape=jax.ShapeDtypeStruct((BN, E), jnp.float32),
        compiler_params=pltpu.CompilerParams(
            dimension_semantics=("parallel",),
            vmem_limit_bytes=VMEM_LIMIT),
    )(f_all, m_all, s2, t2)

    return feats


# --------------------------------------------------------------------------
# Kernel B1: GRU input projection for all 6 gates (both directions), hoisted
# out of the recurrence into a single (L*B, d_pe) x (d_pe, H) pass per gate.
# Gate order (axis 0 of the stacked weights): [reset, update, new] == PyTorch.
# --------------------------------------------------------------------------
def gpo_proj_kernel(pes_ref, wih_f_ref, bih_f_ref, wih_b_ref, bih_b_ref,
                    rf_ref, zf_ref, nf_ref, rb_ref, zb_ref, nb_ref):
    x = pes_ref[...]                                          # (L*B, d_pe)
    outs_f = (rf_ref, zf_ref, nf_ref)
    outs_b = (rb_ref, zb_ref, nb_ref)
    for idx in range(3):
        outs_f[idx][...] = (jnp.dot(x, wih_f_ref[idx],
                                    preferred_element_type=jnp.float32)
                            + bih_f_ref[idx])
        outs_b[idx][...] = (jnp.dot(x, wih_b_ref[idx],
                                    preferred_element_type=jnp.float32)
                            + bih_b_ref[idx])


# --------------------------------------------------------------------------
# Kernel B2: masked bidirectional GRU recurrence (pack_padded semantics),
# linear score and masked softmax(scores / 0.1) over the sequence axis.
# Per-gate weight matrices avoid lane slicing of a 3H-wide gate block; the
# hidden-to-hidden weights are loaded once before the unrolled loops.
# --------------------------------------------------------------------------
def gpo_weights_kernel(gir_f, giz_f, gin_f, gir_b, giz_b, gin_b,
                       mask_ref,
                       whh_f_ref, bhh_f_ref, whh_b_ref, bhh_b_ref,
                       wlin_ref, w_out_ref, emb_scr):
    L, B, H = emb_scr.shape

    # Hoisted hidden-to-hidden weights / biases (loaded once, reused per step).
    u_rf, u_zf, u_nf = whh_f_ref[0], whh_f_ref[1], whh_f_ref[2]
    c_rf, c_zf, c_nf = bhh_f_ref[0], bhh_f_ref[1], bhh_f_ref[2]
    u_rb, u_zb, u_nb = whh_b_ref[0], whh_b_ref[1], whh_b_ref[2]
    c_rb, c_zb, c_nb = bhh_b_ref[0], bhh_b_ref[1], bhh_b_ref[2]

    h0 = jnp.zeros((B, H), jnp.float32)

    def fwd_body(t, h):
        m = mask_ref[t]                                       # (B, 1)
        r = jax.nn.sigmoid(gir_f[t] + jnp.dot(h, u_rf,
                           preferred_element_type=jnp.float32) + c_rf)
        z = jax.nn.sigmoid(giz_f[t] + jnp.dot(h, u_zf,
                           preferred_element_type=jnp.float32) + c_zf)
        n = jnp.tanh(gin_f[t] + r * (jnp.dot(h, u_nf,
                     preferred_element_type=jnp.float32) + c_nf))
        h_new = (1.0 - z) * n + z * h
        h = jnp.where(m > 0.5, h_new, h)                      # frozen past length
        emb_scr[t] = h
        return h

    lax.fori_loop(0, L, fwd_body, h0, unroll=True)

    def bwd_body(i, h):
        t = L - 1 - i
        m = mask_ref[t]
        r = jax.nn.sigmoid(gir_b[t] + jnp.dot(h, u_rb,
                           preferred_element_type=jnp.float32) + c_rb)
        z = jax.nn.sigmoid(giz_b[t] + jnp.dot(h, u_zb,
                           preferred_element_type=jnp.float32) + c_zb)
        n = jnp.tanh(gin_b[t] + r * (jnp.dot(h, u_nb,
                     preferred_element_type=jnp.float32) + c_nb))
        h_new = (1.0 - z) * n + z * h
        h = jnp.where(m > 0.5, h_new, h)
        emb_scr[t] = (emb_scr[t] + h) * 0.5                   # (fwd + bwd) / 2
        return h

    lax.fori_loop(0, L, bwd_body, h0, unroll=True)

    emb = emb_scr[...]                                        # (L, B, H)
    # Linear(d_hidden, 1, bias=False): wlin passed as (1, 1, H)
    scores = jnp.sum(emb * wlin_ref[...], axis=-1, keepdims=True)   # (L, B, 1)
    scores = jnp.where(mask_ref[...] > 0.5, scores, -10000.0) / 0.1
    mx = jnp.max(scores, axis=0, keepdims=True)
    e = jnp.exp(scores - mx)
    denom = jnp.sum(e, axis=0, keepdims=True)
    w_out_ref[...] = e * pl.reciprocal(denom, approx=True)    # EUP reciprocal


def gpo_pool_weights(pes_lbd, mask_lb1, g):
    L, B, d_pe = pes_lbd.shape
    H = g["whh_f"].shape[-1]

    # B1: hoisted input projections (one MXU pass per gate & direction).
    proj_args = (pes_lbd.reshape(L * B, d_pe),
                 g["wih_f"], g["bih_f"], g["wih_b"], g["bih_b"])
    gi = pl.pallas_call(
        gpo_proj_kernel,
        out_shape=tuple(jax.ShapeDtypeStruct((L * B, H), jnp.float32)
                        for _ in range(6)),
        in_specs=[_vmem() for _ in proj_args],
        out_specs=tuple(_vmem() for _ in range(6)),
    )(*proj_args)
    gi = [a.reshape(L, B, H) for a in gi]

    # B2: the sequential recurrence + masked softmax.
    args = (*gi, mask_lb1,
            g["whh_f"], g["bhh_f"], g["whh_b"], g["bhh_b"],
            g["wlin"].reshape(1, 1, H))
    return pl.pallas_call(
        gpo_weights_kernel,
        out_shape=jax.ShapeDtypeStruct((L, B, 1), jnp.float32),
        in_specs=[_vmem() for _ in args],
        out_specs=_vmem(),
        scratch_shapes=[pltpu.VMEM((L, B, H), jnp.float32)],
    )(*args)


# --------------------------------------------------------------------------
# Kernel C: batch-tiled weighted pooling + l2norm.  Several batch rows per
# grid step (amortizes the ~0.35us/step grid overhead); the (L,1) weights
# broadcast over the embedding lanes and the pool is a sublane reduce.
# --------------------------------------------------------------------------
def pool_l2norm_kernel(w_ref, f_ref, out_ref, *, no_imgnorm):
    w = w_ref[...]                                            # (bt, L, 1)
    f = f_ref[...]                                            # (bt, L, E)
    pooled = jnp.sum(f * w, axis=1, keepdims=True)            # (bt, 1, E)
    if not no_imgnorm:
        norm = jnp.sqrt(jnp.sum(pooled * pooled, axis=-1, keepdims=True)) + EPS_L2
        pooled = pooled / norm
    out_ref[...] = pooled


def pooled_l2norm(sorted_feats, pool_w_bl1, no_imgnorm=False, batch_tile=16):
    B, L, E = sorted_feats.shape
    bt = _pick_divisor(B, batch_tile)
    out3 = pl.pallas_call(
        functools.partial(pool_l2norm_kernel, no_imgnorm=no_imgnorm),
        grid=(B // bt,),
        in_specs=[pl.BlockSpec((bt, L, 1), lambda b: (b, 0, 0)),
                  pl.BlockSpec((bt, L, E), lambda b: (b, 0, 0))],
        out_specs=pl.BlockSpec((bt, 1, E), lambda b: (b, 0, 0)),
        out_shape=jax.ShapeDtypeStruct((B, 1, E), jnp.float32),
        compiler_params=pltpu.CompilerParams(
            dimension_semantics=("parallel",),
            vmem_limit_bytes=VMEM_LIMIT),
    )(pool_w_bl1, sorted_feats)
    return out3.reshape(B, E)


# --------------------------------------------------------------------------
# Glue
# --------------------------------------------------------------------------
def positional_encoding_1d(d_model, length):
    position = jnp.arange(length, dtype=jnp.float32)[:, None]
    div_term = jnp.exp(jnp.arange(0, d_model, 2, dtype=jnp.float32)
                       * -(math.log(10000.0) / d_model))
    pe = jnp.zeros((length, d_model), jnp.float32)
    pe = pe.at[:, 0::2].set(jnp.sin(position * div_term))
    pe = pe.at[:, 1::2].set(jnp.cos(position * div_term))
    return pe


def encoder_image_aggr_forward(images, lengths, params, gru_params,
                               d_pe=32, no_imgnorm=False, row_tile=256):
    B, N, D = images.shape
    E = params["wfc"].shape[1]
    max_len = int(max(lengths))                           # static Python int

    # fc(x) + MLP(x)  (Kernels A1/A2/A3)
    feats = fused_fc_mlp(images.reshape(B * N, D).astype(jnp.float32),
                         params, row_tile=row_tile).reshape(B, N, E)

    # GPO pooling weights (Kernels B1/B2)
    lengths_arr = jnp.asarray(lengths, jnp.int32)
    pe = positional_encoding_1d(d_pe, max_len)                          # (L, d_pe)
    mask_bl = jnp.arange(max_len)[None, :] < lengths_arr[:, None]       # (B, L)
    pes_bld = jnp.where(mask_bl[:, :, None], pe[None, :, :], 0.0)       # (B, L, d)
    pes_lbd = jnp.transpose(pes_bld, (1, 0, 2)).astype(jnp.float32)     # (L, B, d)
    mask_lb1 = jnp.transpose(mask_bl)[:, :, None].astype(jnp.float32)   # (L, B, 1)
    w_lb1 = gpo_pool_weights(pes_lbd, mask_lb1, gru_params)             # (L, B, 1)
    pool_weights = jnp.transpose(w_lb1, (1, 0, 2))                      # (B, L, 1)

    # Descending sort along the region axis, per (batch, feature-dim).
    # TODO(synk): torch.sort along dim=1 has no Pallas/Mosaic primitive; plain JAX.
    feats_t = feats[:, :max_len, :]
    mb = mask_bl[:, :, None]
    sf = jnp.where(mb, feats_t, -10000.0)
    sf = -jnp.sort(-sf, axis=1)
    sf = jnp.where(mb, sf, 0.0)

    # Weighted pooling + l2norm (Kernel C)
    out = pooled_l2norm(sf, pool_weights, no_imgnorm=no_imgnorm)
    return out, pool_weights


# --------------------------------------------------------------------------
# Pure-JAX reference (same math, f32, no Pallas) for a sanity check.
# --------------------------------------------------------------------------
def reference_forward(images, lengths, p, g, d_pe=32, no_imgnorm=False):
    B, N, D = images.shape
    x = images.reshape(B * N, D)
    f = x @ p["wfc"] + p["bfc"]
    h = x @ p["w1"] + p["b1"]
    mu = h.mean(0, keepdims=True); var = ((h - mu) ** 2).mean(0, keepdims=True)
    h = jnp.maximum(p["g1"] * (h - mu) / jnp.sqrt(var + EPS_BN) + p["be1"], 0.0)
    m = h @ p["w2"] + p["b2"]
    mu = m.mean(0, keepdims=True); var = ((m - mu) ** 2).mean(0, keepdims=True)
    m = p["g2"] * (m - mu) / jnp.sqrt(var + EPS_BN) + p["be2"]
    feats = (f + m).reshape(B, N, -1)

    max_len = int(max(lengths))
    lengths_arr = jnp.asarray(lengths, jnp.int32)
    pe = positional_encoding_1d(d_pe, max_len)
    mask = jnp.arange(max_len)[None, :] < lengths_arr[:, None]
    pes = jnp.where(mask[:, :, None], pe[None], 0.0)

    H = g["whh_f"].shape[-1]

    def cell(xt, hh, wih, whh, bih, bhh):
        r = jax.nn.sigmoid(xt @ wih[0] + bih[0] + hh @ whh[0] + bhh[0])
        z = jax.nn.sigmoid(xt @ wih[1] + bih[1] + hh @ whh[1] + bhh[1])
        n = jnp.tanh(xt @ wih[2] + bih[2] + r * (hh @ whh[2] + bhh[2]))
        return (1 - z) * n + z * hh

    def scan_dir(seq, msk, wih, whh, bih, bhh):
        def step(hh, inp):
            xt, mt = inp
            hn = cell(xt, hh, wih, whh, bih, bhh)
            hh = jnp.where(mt[:, None] > 0.5, hn, hh)
            return hh, hh
        _, outs = lax.scan(step, jnp.zeros((B, H), jnp.float32), (seq, msk))
        return outs

    seq = jnp.transpose(pes, (1, 0, 2))
    msk = jnp.transpose(mask.astype(jnp.float32), (1, 0))
    out_f = scan_dir(seq, msk, g["wih_f"], g["whh_f"], g["bih_f"], g["bhh_f"])
    out_b = scan_dir(seq[::-1], msk[::-1],
                     g["wih_b"], g["whh_b"], g["bih_b"], g["bhh_b"])[::-1]
    out_emb = (out_f + out_b) * 0.5
    scores = jnp.sum(out_emb * g["wlin"][None], axis=-1, keepdims=True)  # (L, B, 1)
    scores = jnp.where(msk[:, :, None] > 0.5, scores, -10000.0) / 0.1
    w = jax.nn.softmax(scores, axis=0)
    pool_w = jnp.transpose(w, (1, 0, 2))

    feats_t = feats[:, :max_len, :]
    mb = mask[:, :, None]
    sf = jnp.where(mb, feats_t, -10000.0)
    sf = -jnp.sort(-sf, axis=1)
    sf = jnp.where(mb, sf, 0.0)
    pooled = jnp.sum(sf * pool_w, axis=1)
    if no_imgnorm:
        return pooled
    norm = jnp.sqrt(jnp.sum(pooled ** 2, -1, keepdims=True)) + EPS_L2
    return pooled / norm


# --------------------------------------------------------------------------
# Deterministic parameter init
# --------------------------------------------------------------------------
def init_params(key, img_dim, embed_size, d_pe=32, d_hidden=32):
    keys = jax.random.split(key, 16)
    hid = embed_size // 2

    def u(k, shape, r):
        return jax.random.uniform(k, shape, jnp.float32, -r, r)

    r_fc = math.sqrt(6.0) / math.sqrt(img_dim + embed_size)   # module's xavier init
    params = dict(
        wfc=u(keys[0], (img_dim, embed_size), r_fc),
        bfc=jnp.zeros((1, embed_size), jnp.float32),
        w1=u(keys[1], (img_dim, hid), 1.0 / math.sqrt(img_dim)),
        b1=u(keys[2], (1, hid), 1.0 / math.sqrt(img_dim)),
        g1=jnp.ones((1, hid), jnp.float32),
        be1=jnp.zeros((1, hid), jnp.float32),
        w2=u(keys[3], (hid, embed_size), 1.0 / math.sqrt(hid)),
        b2=u(keys[4], (1, embed_size), 1.0 / math.sqrt(hid)),
        g2=jnp.ones((1, embed_size), jnp.float32),
        be2=jnp.zeros((1, embed_size), jnp.float32),
    )
    rg = 1.0 / math.sqrt(d_hidden)
    # Per-gate stacked layout: axis 0 = (reset, update, new) == PyTorch [r|z|n].
    gru = dict(
        wih_f=u(keys[5], (3, d_pe, d_hidden), rg),
        whh_f=u(keys[6], (3, d_hidden, d_hidden), rg),
        bih_f=u(keys[7], (3, 1, d_hidden), rg),
        bhh_f=u(keys[8], (3, 1, d_hidden), rg),
        wih_b=u(keys[9], (3, d_pe, d_hidden), rg),
        whh_b=u(keys[10], (3, d_hidden, d_hidden), rg),
        bih_b=u(keys[11], (3, 1, d_hidden), rg),
        bhh_b=u(keys[12], (3, 1, d_hidden), rg),
        wlin=u(keys[13], (1, d_hidden), rg),   # Linear(d_hidden, 1, bias=False)
    )
    return params, gru


if __name__ == "__main__":
    B, N, IMG_DIM, EMBED = 2, 16, 32, 32
    D_PE, D_HID = 32, 32
    lengths = [16, 10]                                 # image_lengths (max == N)

    key = jax.random.PRNGKey(0)
    k_img, k_par = jax.random.split(key)
    images = jax.random.normal(k_img, (B, N, IMG_DIM), jnp.float32)
    params, gru_params = init_params(k_par, IMG_DIM, EMBED, D_PE, D_HID)

    # row_tile=16 forces a 2-step row grid at this toy size (B*N = 32 rows) so
    # the tiled / accumulator (two-pass BatchNorm) path is actually exercised
    # with bf16-legal (multiple-of-16) sublane tiles.
    out, pool_w = encoder_image_aggr_forward(images, lengths, params, gru_params,
                                             d_pe=D_PE, no_imgnorm=False,
                                             row_tile=16)
    jax.block_until_ready(out)

    ref = reference_forward(images, lengths, params, gru_params, d_pe=D_PE)
    assert out.shape == (B, EMBED)
    assert pool_w.shape == (B, N, 1)
    assert np.allclose(np.asarray(out), np.asarray(ref), atol=5e-2, rtol=5e-2)

    print("KERNEL_OK")
</pallas_src>

<mosaic_0001>
module attributes {stable_mosaic.version = 11 : i64} {
  func.func @feat_proj_kernel(%arg0: i32, %arg1: memref<16x32xf32, #tpu.memory_space<vmem>>, %arg2: memref<32x48xbf16, #tpu.memory_space<vmem>>, %arg3: memref<1x48xf32, #tpu.memory_space<vmem>>, %arg4: memref<16x32xbf16, #tpu.memory_space<vmem>>, %arg5: memref<16x16xbf16, #tpu.memory_space<vmem>>, %arg6: memref<2x16xf32, #tpu.memory_space<vmem>>) attributes {dimension_semantics = [#tpu.dimension_semantics<arbitrary>], iteration_bounds = array<i64: 2>, scalar_prefetch = 0 : i64, scratch_operands = 0 : i64, tpu.core_type = #tpu.core_type<tc>, window_params = [{transform_indices = @transform_0, window_bounds = array<i64: 16, 32>}, {pipeline_mode = #tpu.pipeline_mode<synchronous>, transform_indices = @transform_1, window_bounds = array<i64: 32, 48>}, {pipeline_mode = #tpu.pipeline_mode<synchronous>, transform_indices = @transform_2, window_bounds = array<i64: 1, 48>}, {transform_indices = @transform_3, window_bounds = array<i64: 16, 32>}, {transform_indices = @transform_4, window_bounds = array<i64: 16, 16>}, {pipeline_mode = #tpu.pipeline_mode<synchronous>, transform_indices = @transform_5, window_bounds = array<i64: 2, 16>}]} {
    %c0 = arith.constant 0 : index
    %c0_0 = arith.constant 0 : index
    %0 = vector.load %arg1[%c0, %c0_0] : memref<16x32xf32, #tpu.memory_space<vmem>>, vector<16x32xf32>
    %1 = arith.truncf %0 : vector<16x32xf32> to vector<16x32xbf16>
    %c0_1 = arith.constant 0 : index
    %c0_2 = arith.constant 0 : index
    %2 = vector.load %arg2[%c0_1, %c0_2] : memref<32x48xbf16, #tpu.memory_space<vmem>>, vector<32x48xbf16>
    %cst = arith.constant dense<0.000000e+00> : vector<16x48xf32>
    %3 = tpu.matmul %1, %2, %cst {dimension_numbers = #tpu.dot_dimension_numbers<[1], [0], [0], [1], [0, 0, 1, 1], [], []>} : vector<16x32xbf16>, vector<32x48xbf16>, vector<16x48xf32> -> vector<16x48xf32>
    %c0_3 = arith.constant 0 : index
    %c0_4 = arith.constant 0 : index
    %4 = vector.load %arg3[%c0_3, %c0_4] : memref<1x48xf32, #tpu.memory_space<vmem>>, vector<1x48xf32>
    %5 = vector.broadcast %4 : vector<1x48xf32> to vector<16x48xf32>
    %6 = arith.addf %3, %5 : vector<16x48xf32>
    %7 = vector.extract_strided_slice %6 {offsets = [0, 0], sizes = [16, 32], strides = [1, 1]} : vector<16x48xf32> to vector<16x32xf32>
    %8 = vector.extract_strided_slice %6 {offsets = [0, 32], sizes = [16, 16], strides = [1, 1]} : vector<16x48xf32> to vector<16x16xf32>
    %9 = arith.truncf %7 : vector<16x32xf32> to vector<16x32xbf16>
    %c0_5 = arith.constant 0 : index
    %c0_6 = arith.constant 0 : index
    %10 = vector.load %arg4[%c0_5, %c0_6] : memref<16x32xbf16, #tpu.memory_space<vmem>>, vector<16x32xbf16>
    tpu.vector_store %arg4[%c0_5, %c0_6], %9 {strides = array<i32>} : memref<16x32xbf16, #tpu.memory_space<vmem>>, vector<16x32xbf16>,
    %11 = arith.truncf %8 : vector<16x16xf32> to vector<16x16xbf16>
    %c0_7 = arith.constant 0 : index
    %c0_8 = arith.constant 0 : index
    %12 = vector.load %arg5[%c0_7, %c0_8] : memref<16x16xbf16, #tpu.memory_space<vmem>>, vector<16x16xbf16>
    tpu.vector_store %arg5[%c0_7, %c0_8], %11 {strides = array<i32>} : memref<16x16xbf16, #tpu.memory_space<vmem>>, vector<16x16xbf16>,
    %c0_i32 = arith.constant 0 : i32
    %13 = arith.cmpi eq, %arg0, %c0_i32 : i32
    %14 = arith.extui %13 : i1 to i32
    %c0_i32_9 = arith.constant 0 : i32
    %15 = arith.cmpi ne, %14, %c0_i32_9 : i32
    scf.if %15 {
      %cst_19 = arith.constant 0.000000e+00 : f32
      %27 = vector.broadcast %cst_19 : f32 to vector<2x16xf32>
      %c0_20 = arith.constant 0 : index
      %c0_21 = arith.constant 0 : index
      %28 = vector.load %arg6[%c0_20, %c0_21] : memref<2x16xf32, #tpu.memory_space<vmem>>, vector<2x16xf32>
      tpu.vector_store %arg6[%c0_20, %c0_21], %27 {strides = array<i32>} : memref<2x16xf32, #tpu.memory_space<vmem>>, vector<2x16xf32>,
    } else {
    }
    %c0_10 = arith.constant 0 : index
    %c0_11 = arith.constant 0 : index
    %16 = vector.load %arg6[%c0_10, %c0_11] : memref<2x16xf32, #tpu.memory_space<vmem>>, vector<1x16xf32>
    %cst_12 = arith.constant dense<0.000000e+00> : vector<16xf32>
    %17 = vector.multi_reduction <add>, %8, %cst_12 [0] : vector<16x16xf32> to vector<16xf32>
    %18 = vector.shape_cast %17 : vector<16xf32> to vector<1x16xf32>
    %19 = arith.addf %16, %18 : vector<1x16xf32>
    %c0_13 = arith.constant 0 : index
    %c0_14 = arith.constant 0 : index
    %20 = vector.load %arg6[%c0_13, %c0_14] : memref<2x16xf32, #tpu.memory_space<vmem>>, vector<1x16xf32>
    tpu.vector_store %arg6[%c0_13, %c0_14], %19 {strides = array<i32>} : memref<2x16xf32, #tpu.memory_space<vmem>>, vector<1x16xf32>,
    %c1 = arith.constant 1 : index
    %c0_15 = arith.constant 0 : index
    %21 = vector.load %arg6[%c1, %c0_15] : memref<2x16xf32, #tpu.memory_space<vmem>>, vector<1x16xf32>
    %22 = arith.mulf %8, %8 : vector<16x16xf32>
    %cst_16 = arith.constant dense<0.000000e+00> : vector<16xf32>
    %23 = vector.multi_reduction <add>, %22, %cst_16 [0] : vector<16x16xf32> to vector<16xf32>
    %24 = vector.shape_cast %23 : vector<16xf32> to vector<1x16xf32>
    %25 = arith.addf %21, %24 : vector<1x16xf32>
    %c1_17 = arith.constant 1 : index
    %c0_18 = arith.constant 0 : index
    %26 = vector.load %arg6[%c1_17, %c0_18] : memref<2x16xf32, #tpu.memory_space<vmem>>, vector<1x16xf32>
    tpu.vector_store %arg6[%c1_17, %c0_18], %25 {strides = array<i32>} : memref<2x16xf32, #tpu.memory_space<vmem>>, vector<1x16xf32>,
    return
  }
  func.func @transform_0(%arg0: i32) -> (i32, i32) {
    %c0_i32 = arith.constant 0 : i32
    %c0_i32_0 = arith.constant 0 : i32
    return %arg0, %c0_i32 : i32, i32
  }
  func.func @transform_1(%arg0: i32) -> (i32, i32) {
    %c0_i32 = arith.constant 0 : i32
    %c0_i32_0 = arith.constant 0 : i32
    %c0_i32_1 = arith.constant 0 : i32
    return %c0_i32, %c0_i32_0 : i32, i32
  }
  func.func @transform_2(%arg0: i32) -> (i32, i32) {
    %c0_i32 = arith.constant 0 : i32
    %c0_i32_0 = arith.constant 0 : i32
    %c0_i32_1 = arith.constant 0 : i32
    return %c0_i32, %c0_i32_0 : i32, i32
  }
  func.func @transform_3(%arg0: i32) -> (i32, i32) {
    %c0_i32 = arith.constant 0 : i32
    %c0_i32_0 = arith.constant 0 : i32
    return %arg0, %c0_i32 : i32, i32
  }
  func.func @transform_4(%arg0: i32) -> (i32, i32) {
    %c0_i32 = arith.constant 0 : i32
    %c0_i32_0 = arith.constant 0 : i32
    return %arg0, %c0_i32 : i32, i32
  }
  func.func @transform_5(%arg0: i32) -> (i32, i32) {
    %c0_i32 = arith.constant 0 : i32
    %c0_i32_0 = arith.constant 0 : i32
    %c0_i32_1 = arith.constant 0 : i32
    return %c0_i32, %c0_i32_0 : i32, i32
  }
}

</mosaic_0001>

<bundles_post_ra>
// kernel: tpu_custom_call.1
= control target key start
LH: loop header
LB: loop body
LE: loop exit
PB: predicated region body
PF: predicated region fallthrough
CT: control target
= control target key end

     0   :  { %11 = vsyncpa [#allocation3], 0  ;;  %s1081_s0 = inlined_call_operand.hbm [shape: f32[32,32], index: 0, kind: input, shape index: {}]   ;;  %s1082_s1 = inlined_call_operand.hbm [shape: bf16[32,48], index: 1, kind: input, shape index: {}]   ;;  %s1083_s2 = inlined_call_operand.vmem [shape: f32[1,48], index: 2, kind: input, shape index: {}]   ;;  %s1084_s3 = inlined_call_operand.hbm [shape: bf16[32,32], index: 3, kind: output, shape index: {0}]   ;;  %s1085_s4 = inlined_call_operand.vmem [shape: bf16[32,16], index: 4, kind: output, shape index: {1}]   ;;  %s1086_s5 = inlined_call_operand.hbm [shape: f32[2,16], index: 5, kind: output, shape index: {2}]  }
   0x1   :  { %13 = vsyncpa [#allocation3 + $0x1], 0 }
   0x2   :  { %14 = vsyncpa [#allocation6], 0 }
   0x3   :  { %15 = vsyncpa [#allocation4], 0 }
   0x4   :  { %17 = vsyncpa [#allocation4 + $0x1], 0 }
   0x5   :  { %18 = vsyncpa [#allocation9], 0  ;;  %s873_s18 = smov 0   ;;  %s875_s19 = smov 0  }
   0x6   :  { %s877_s20 = smov 0   ;;  %s879_s21 = smov 0  }
   0x7 LB: > { %s894_s22 = sadd.s32 4294967295, %s827_s21   ;;  %s559_s23 = sadd.s32 4294967294, %s827_s21   ;;  %s827_s21 = sphi %s879_s21, %s1113_s21   ;;  %s823_s20 = sphi %s877_s20, %s1112_s20   ;;  %s819_s19 = sphi %s875_s19, %s1111_s19   ;;  %s815_s18 = sphi %s873_s18, %s1110_s18  }
   0x8   : > { %p44_p0 = scmp.ne.s32.totalorder %s819_s19, %s815_s18  ;;  %p1087_p1 = scmp.eq.s32.totalorder %s894_s22, 0 }
   0x9   : > { %p116_p3 = scmp.eq.s32.totalorder %s559_s23, 1  ;;  %p560_p5 = scmp.ge.s32.totalorder %s827_s21, 1 }
   0xa   : > { %p903_p4 = por %p1087_p1, %p44_p0  ;;  %p170_p7 = scmp.lt.s32.totalorder %s827_s21, 3 }
   0xb   : > { %p908_p6 = por %p116_p3, %p44_p0  ;;  %s829_s27 = smov [#allocation5]  }
   0xc   : > { %s1091_s24 = scalar_select %p903_p4, 1, 0 }
   0xd   : > { %s1092_s25 = scalar_select %p908_p6, 1, 0 }
   0xe   : > { %p914_p9 = pnand %p560_p5, %p170_p7  ;;  %s182_s28 = sshll.u32 %s829_s27, 4  ;;  %s183_s28 = int_to_ptr.vmem [resolvable:$true] %s182_s28 }
   0xf   : > { %s928_s30 = sadd.s32 1, %s827_s21   ;;  %s31_s6 = sadd.s32 1, %s823_s20 }
  0x10   : > { %s1093_s26 = scalar_select %p914_p9, 1, 0 }
  0x11   : > { %p613_p10 = pneg %p914_p9  ;;  %s28_s7 = ssub.s32 %s827_s21, %s928_s30 }
  0x12   : > { %s688_s8 = scalar_lea.vmem %s183_s28, 256  ;;  %p696_p7 = scmp.lt.s32.totalorder %s183_s28, %s183_s28 }
  0x13   : > { %p923_p12 = pnand %p613_p10, %p1087_p1  ;;  %p689_p0 = scmp.ne.s32.totalorder %s183_s28, %s688_s8 }
  0x14   : > { %p697_p8 = scmp.lt.s32.totalorder %s688_s8, %s688_s8 }
  0x15   : > { %p679_p13 = pneg %p923_p12 }
  0x16   : > { %p698_p11 = por %p697_p8, %p696_p7 }
  0x17   : > { %p691_p3 = pnand %p689_p0, %p679_p13 }
  0x19   : > { %p692_p5 = pneg %p691_p3 }
  0x1b   : > { %p699_p2 = pnand %p698_p11, %p692_p5 }
  0x1d   : > { %702 = shalt.err (!%p699_p2)
}
  0x1e   : > { %s830_s9 = smov 64   ;;  %s831_s10 = smov 4  }
  0x1f   : > { %616 = dma.hbm_to_vmem [thread:$0]  (!%p923_p12), %s1082_s1, 256, %s183_s28, [#allocation6], %s830_s9, %s830_s9, %s831_s10  }
  0x20   : > { %p29_p10 = scmp.eq.s32.totalorder %s28_s7, 0  ;;  %p38_p8 = scmp.ne.s32.totalorder %s823_s20, %s819_s19 }
  0x21   : > { %p39_p11 = scmp.eq.s32.totalorder %s827_s21, 0  ;;  %p626_p2 = scmp.lt.s32.totalorder %s827_s21, 2 }
  0x22   : > { %s945_s13 = scalar_select %p29_p10, %s823_s20, %s31_s6  }
  0x23   : > { %p40_p13 = por %p39_p11, %p38_p8  ;;  %p1095_p0 = scmp.eq.s32.totalorder %s894_s22, 1 }
  0x24   : > { %s199_s15 = sand.u32 1, %s823_s20   ;;  %s586_s16 = sshll.u32 %s827_s21, 8 }
  0x25   : > { %p949_p3 = por %p1095_p0, %p38_p8  ;;  %s563_s17 = sshll.u32 %s199_s15, 4 }
  0x26   : > { %s958_s29 = scalar_lea.hbm %s1081_s0, %s586_s16  ;;  %s203_s28 = scalar_lea.vmem [#allocation2], %s563_s17 }
  0x27   : > { %s1096_s14 = scalar_select %p949_p3, 1, 0 }
  0x28   : > { %s210_s6 = sshll.u32 %s203_s28, 4  ;;  %p960_p12 = pnand %p626_p2, %p40_p13  ;;  %s964_s6 = int_to_ptr.vmem [resolvable:$true] %s210_s6 }
  0x29   : > { %s966_s8 = scalar_lea.sflag [#allocation3], %s199_s15  ;;  %s703_s9 = scalar_lea.hbm %s958_s29, 256 }
  0x2a   : > { %p704_p5 = scmp.ne.s32.totalorder %s958_s29, %s703_s9  ;;  %p705_p7 = pneg %p960_p12 }
  0x2b   : > { %s708_s12 = scalar_lea.hbm %s1081_s0, 512  ;;  %p709_p11 = scmp.lt.s32.totalorder %s958_s29, %s1081_s0 }
  0x2c   : > { %p706_p10 = pnand %p705_p7, %p704_p5  ;;  %p710_p2 = scmp.lt.s32.totalorder %s708_s12, %s703_s9 }
  0x2e   : > { %p707_p8 = pneg %p706_p10  ;;  %p711_p13 = por %p710_p2, %p709_p11 }
  0x30   : > { %p712_p0 = pnand %p711_p13, %p707_p8 }
  0x32   : > { %715 = shalt.err (!%p712_p0)
}
  0x33   : > { %s716_s15 = scalar_lea.vmem %s964_s6, 256  ;;  %s832_s23 = smov [#allocation2]  }
  0x34   : > { %p717_p1 = scmp.ne.s32.totalorder %s964_s6, %s716_s15  ;;  %s721_s27 = sshll.u32 %s832_s23, 4  ;;  %s722_s27 = int_to_ptr.vmem [resolvable:$false] %s721_s27 }
  0x35   : > { %s723_s28 = scalar_lea.vmem %s722_s27, 512  ;;  %p724_p10 = scmp.lt.s32.totalorder %s964_s6, %s722_s27 }
  0x36   : > { %p719_p6 = pnand %p717_p1, %p705_p7  ;;  %p725_p3 = scmp.lt.s32.totalorder %s723_s28, %s716_s15 }
  0x38   : > { %p720_p5 = pneg %p719_p6  ;;  %p726_p4 = por %p725_p3, %p724_p10 }
  0x3a   : > { %p727_p9 = pnand %p726_p4, %p720_p5 }
  0x3c   : > { %730 = shalt.err (!%p727_p9)
}
  0x3d   : > { %s833_s9 = smov 128   ;;  %s834_s10 = smov 8  }
  0x3e   : > { %620 = dma.hbm_to_vmem [thread:$0]  (!%p960_p12), %s958_s29, 256, %s964_s6, %s966_s8, %s833_s9, %s833_s9, %s834_s10  }
  0x3f   : > { %p1098_p1 = scmp.ne.s32.totalorder %s1093_s26, 0 }
  0x40   : > { %s990_s11 = sand.u32 (!%p1098_p1), 1, %s819_s19   ;;  %p1099_p4 = scmp.ne.s32.totalorder (!%p1098_p1), %s1091_s24, 0 }
  0x41   : > { %222 = sbr.rel (%p1098_p1) target bundleno = 559 (0x22f), region = 32  ;;  %s567_s12 = sshll.u32 (!%p1098_p1), %s990_s11, 4 }
  0x42   : > { %s225_s16 = scalar_lea.sflag (!%p1098_p1), [#allocation3], %s990_s11  ;;  %s228_s17 = scalar_lea.vmem (!%p1098_p1), [#allocation2], %s567_s12 }
  0x46   : > { %798 = dma.done.wait (%p1099_p4), %s225_s16, 256  }
  0x47   : > { %800 = vsyncadd (%p1099_p4), %s225_s16, 4294967040  ;;  %p1100_p6 = scmp.eq.s32.totalorder %s894_s22, 0 }
  0x49   : > { %802 = dma.done.wait (%p1100_p6), [#allocation6], 256   ;;  %p1101_p9 = pmov %p1100_p6 }
  0x4a   : > { %v835_v0 = vmov 0.0   ;;  %vm836_vm0 = vmmov 0   ;;  %v675_v1 = vld [vmem:[#allocation5 + $0x8] sm:$0xff]   ;;  %v676_v2 = vld [vmem:[#allocation5] sm:$0xff]   ;;  %vm299_vm1 = vcmask 261120   ;;  %s569_s29 = sshll.u32 %s990_s11, 3 }
  0x4b   : > { %804 = vsyncadd (%p1101_p9), [#allocation6], 4294967040  ;;  %593 = vmatprep.subr.bf16.mxu0 %v835_v0  ;;  %597 = vmatprep.mubr.msk.bf16.mxu0 %vm836_vm0, %v835_v0  ;;  %v273_v3 = vld [vmem:[%s228_s17] sm:$0xff]  ;;  %v274_v4 = vld [vmem:[%s228_s17 + $0x8] sm:$0xff]  ;;  %vm352_vm2 = vcmask 257024   ;;  %s1006_s6 = scalar_lea.vmem [#allocation7], %s569_s29 }
  0x4c   : > { %594 = vmatpush3.bf16.msra.mxu0 %v675_v1  ;;  %v275_v5 = vpack.c.bf16 %v274_v4, %v273_v3  ;;  %v572_v6 = vld [vmem:[%s1083_s2] ss:$0 sm:$0xff]  ;;  %s837_s7 = smov 96   ;;  %s570_s8 = sshll.u32 %s894_s22, 1  ;;  %vm361_vm3 = vcmask 125952  }
  0x4d   : > { %595 = vmatprep.subr.bf16.mxu0 %v835_v0  ;;  %p267_p3 = scmp.lt.s32.totalorder %s570_s8, 3  ;;  %p1102_p12 = scmp.ne.s32.totalorder %s894_s22, 0 }
  0x4f   : > { %s1115_s8 = smov (!%p267_p3, %s570_s8), 3 }
  0x50   : > { %596 = vmatpush3.bf16.msra.mxu0 %v676_v2  ;;  %s571_s15 = sshll.u32 %s1115_s8, 2 }
  0x51   : > { %s270_s28 = scalar_lea.vmem %s1085_s4, %s571_s15 }
  0x53   : > { %598 = vmatmul.mubr.msk.bf16.vlgmr.msra.gmra.mxu0 %vm299_vm1, %v275_v5 }
 0x113   : > { %v337_v7 = vpop.f32.mrf.mxu0 }
 0x114   : > { %v338_v8 = vadd.f32 %v572_v6, %v337_v7 }
 0x115   : > { %v599_v9 = vpop.f32.mrf.mxu0 }
 0x116   : > { %v587_v10 = vpack.c.bf16 %v338_v8, %v338_v8 }
 0x117   : > { %v340_v11 = vpop.f32.mrf.mxu0 }
 0x118   : > { %353 = vst.msk [vmem:[%s1006_s6] sm:$0xf] %vm352_vm2, %v587_v10  ;;  %v341_v12 = vadd.f32 %v572_v6, %v340_v11  ;;  %355 = vrot.lane.b32.xlu0 %v587_v10, %s837_s7 }
 0x119   : > { %v600_v13 = vpop.f32.mrf.mxu0 }
 0x11a   : > { %v588_v14 = vpack.c.bf16 %v341_v12, %v341_v12 }
 0x11c   : > { %354 = vst.msk [vmem:[%s1006_s6 + $0x4] sm:$0xf] %vm352_vm2, %v588_v14  ;;  %357 = vrot.lane.b32.xlu0 %v588_v14, %s837_s7 }
 0x18a   : > { %v356_v15 = vpop.permute.xlu0 %355 }
 0x18b   : > { %362 = vst.msk [vmem:[%s270_s28] sm:$0xf] %vm361_vm3, %v356_v15  ;;  %367 = sbr.rel (%p1102_p12) target bundleno = 402 (0x192), region = 44 }
 0x18e   : > { %v358_v16 = vpop.permute.xlu0 %357 }
 0x18f   : > { %363 = vst.msk [vmem:[%s270_s28 + $0x4] sm:$0xf] %vm361_vm3, %v358_v16 }
 0x190   : > { %vm368_vm4 = vcmask 123904   ;;  %v838_v17 = vmov 0.0  }
 0x191   : > { %369 = vst.msk [vmem:[#allocation8] sm:$0x3] %vm368_vm4, %v838_v17 }
 0x192 PF: > { %vm371_vm5 = vcmask 392448   ;;  %v389_v18 = vmul.f32 %v338_v8, %v338_v8  ;;  %v390_v19 = vmul.f32 %v341_v12, %v341_v12  ;;  %s589_s9 = sshll.u32 %s894_s22, 7  ;;  %s425_s17 = sshll.u32 %s1006_s6, 4  ;;  %s1025_s17 = int_to_ptr.vmem [resolvable:$true] %s425_s17 }
 0x193   : > { %v372_v20 = vsel %vm371_vm5, %v338_v8, 0.0  ;;  %v373_v21 = vsel %vm371_vm5, %v341_v12, 0.0  ;;  %s1022_s16 = scalar_lea.hbm %s1084_s3, %s589_s9  ;;  %s407_s24 = scalar_lea.sflag [#allocation4], %s990_s11 }
 0x194   : > { %v374_v22 = vadd.f32 %v373_v21, %v372_v20  ;;  %v391_v23 = vsel %vm371_vm5, %v389_v18, 0.0  ;;  %v392_v24 = vsel %vm371_vm5, %v390_v19, 0.0  ;;  %s731_s26 = scalar_lea.vmem %s1025_s17, 128  ;;  %p1103_p8 = scmp.ne.s32.totalorder %s1096_s14, 0 }
 0x195   : > { %v393_v25 = vadd.f32 %v392_v24, %v391_v23  ;;  %p732_p7 = scmp.ne.s32.totalorder %s1025_s17, %s731_s26  ;;  %s839_s29 = smov [#allocation7]  }
 0x196   : > { %v375_v26 = vrot.slane %v374_v22, 4  ;;  %s735_s8 = sshll.u32 %s839_s29, 4  ;;  %s736_s8 = int_to_ptr.vmem [resolvable:$false] %s735_s8 }
 0x197   : > { %v394_v27 = vrot.slane %v393_v25, 4  ;;  %p733_p11 = pnand %p732_p7, %p1103_p8  ;;  %s737_s15 = scalar_lea.vmem %s736_s8, 256 }
 0x198   : > { %v376_v28 = vadd.f32 %v375_v26, %v374_v22  ;;  %p738_p13 = scmp.lt.s32.totalorder %s1025_s17, %s736_s8  ;;  %p739_p0 = scmp.lt.s32.totalorder %s737_s15, %s731_s26 }
 0x199   : > { %v395_v29 = vadd.f32 %v394_v27, %v393_v25  ;;  %p734_p2 = pneg %p733_p11 }
 0x19a   : > { %v377_v30 = vrot.slane %v376_v28, 2  ;;  %p740_p5 = por %p739_p0, %p738_p13 }
 0x19b   : > { %v396_v31 = vrot.slane %v395_v29, 2 }
 0x19c   : > { %v378_v32 = vadd.f32 %v377_v30, %v376_v28  ;;  %p741_p10 = pnand %p740_p5, %p734_p2 }
 0x19d   : > { %v397_v33 = vadd.f32 %v396_v31, %v395_v29 }
 0x19e   : > { %744 = shalt.err (!%p741_p10)
}
 0x19f   : > { %s745_s6 = scalar_lea.hbm %s1022_s16, 128  ;;  %s749_s28 = scalar_lea.hbm %s1084_s3, 256 }
 0x1a0   : > { %p746_p1 = scmp.ne.s32.totalorder %s1022_s16, %s745_s6  ;;  %p750_p9 = scmp.lt.s32.totalorder %s1022_s16, %s1084_s3 }
 0x1a1   : > { %p751_p3 = scmp.lt.s32.totalorder %s749_s28, %s745_s6 }
 0x1a2   : > { %p747_p4 = pnand %p746_p1, %p1103_p8 }
 0x1a3   : > { %p752_p12 = por %p751_p3, %p750_p9 }
 0x1a4   : > { %p748_p6 = pneg %p747_p4 }
 0x1a6   : > { %p753_p7 = pnand %p752_p12, %p748_p6 }
 0x1a8   : > { %756 = shalt.err (!%p753_p7)
}
 0x1a9   : > { %s840_s12 = smov 64   ;;  %s841_s26 = smov 4   ;;  %v379_v34 = vrot.slane %v378_v32, 1  ;;  %v398_v35 = vrot.slane %v397_v33, 1  ;;  %v370_v38 = vld [vmem:[#allocation8] sm:$0x1] }
 0x1aa   : > { %607 = dma.vmem_to_hbm [thread:$0]  (%p1103_p8), %s1025_s17, 128, %s1022_s16, %s407_s24, %s840_s12, %s840_s12, %s841_s26   ;;  %vm386_vm6 = vcmask 122880   ;;  %v388_v41 = vld [vmem:[#allocation8 + $0x1] sm:$0x1] }
 0x1ab   : > { %v380_v36 = vadd.f32 %v379_v34, %v378_v32  ;;  %v399_v37 = vadd.f32 %v398_v35, %v397_v33  ;;  %s842_s29 = smov [#allocation8]   ;;  %p1104_p11 = scmp.eq.s32.totalorder %s894_s22, 1 }
 0x1ac   : > { %s443_s8 = sshll.u32 %s842_s29, 4  ;;  %s444_s8 = int_to_ptr.vmem [resolvable:$true] %s443_s8 }
 0x1ad   : > { %382 = vrot.lane.b32.xlu0 %v380_v36, %s837_s7  ;;  %s757_s14 = scalar_lea.vmem %s444_s8, 32  ;;  %p764_p0 = scmp.lt.s32.totalorder %s444_s8, %s444_s8 }
 0x1ae   : > { %p758_p8 = scmp.ne.s32.totalorder %s444_s8, %s757_s14  ;;  %p765_p5 = scmp.lt.s32.totalorder %s757_s14, %s757_s14 }
 0x1b0   : > { %p759_p2 = pnand %p758_p8, %p1104_p11  ;;  %p766_p10 = por %p765_p5, %p764_p0 }
 0x1b1   : > { %401 = vrot.lane.b32.xlu0 %v399_v37, %s837_s7 }
 0x1b2   : > { %p760_p13 = pneg %p759_p2 }
 0x1b4   : > { %p767_p1 = pnand %p766_p10, %p760_p13 }
 0x21f   : > { %v383_v39 = vpop.permute.xlu0 %382 }
 0x220   : > { %v385_v40 = vadd.f32 %v383_v39, %v370_v38 }
 0x222   : > { %387 = vst.msk [vmem:[#allocation8] sm:$0x1] %vm386_vm6, %v385_v40 }
 0x223   : > { %v402_v42 = vpop.permute.xlu0 %401 }
 0x224   : > { %v404_v43 = vadd.f32 %v402_v42, %v388_v41 }
 0x226   : > { %405 = vst.msk [vmem:[#allocation8 + $0x1] sm:$0x1] %vm386_vm6, %v404_v43 }
 0x227   : > { %770 = shalt.err (!%p767_p1)
}
 0x228   : > { %p1105_p4 = pmov %p1104_p11 }
 0x22a   : > { %609 = dma.vmem_to_hbm [thread:$0]  (%p1105_p4), %s444_s8, 32, %s1086_s5, [#allocation9]  }
 0x22b   : > { %p1106_p6 = pmov %p1105_p4 }
 0x22c   : > { %p1107_p9 = pmov %p1105_p4 }
 0x22d   : > { %806 = dma.done.wait (%p1106_p6), [#allocation9], 32  }
 0x22e   : > { %808 = vsyncadd (%p1107_p9), [#allocation9], 4294967264 }
 0x22f PF: > { %s459_s16 = sand.u32 1, %s815_s18   ;;  %p1108_p3 = scmp.ne.s32.totalorder %s1092_s25, 0 }
 0x230   : > { %p1109_p12 = scmp.ge.s32.totalorder %s827_s21, 2  ;;  %s460_s17 = scalar_lea.sflag [#allocation4], %s459_s16 }
 0x232   : > { %p622_p7 = pnand %p1109_p12, %p1108_p3 }
 0x234   : > { %p623_p8 = pneg %p622_p7 }
 0x236   : > { %810 = dma.done.wait (%p623_p8), %s460_s17, 128  }
 0x237   : > { %812 = vsyncadd (%p623_p8), %s460_s17, 4294967168  ;;  %p21_p11 = scmp.ge.s32.totalorder %s928_s30, 4   ;;  %s1110_s18 = smov %s819_s19 }
 0x238   : > { %s1111_s19 = smov %s823_s20  ;;  %s1112_s20 = smov %s945_s13 }
 0x239   : > { %s1113_s21 = smov %s928_s30  ;;  %23 = sbr.rel (!%p21_p11) target bundleno = 7 (0x7), region = 105 }
 0x23e   :  { %473 = vsyncpa [#allocation3], 1 }
 0x23f   :  { %475 = vsyncpa [#allocation3 + $0x1], 1 }
 0x240   :  { %476 = vsyncpa [#allocation6], 1 }
 0x241   :  { %477 = vsyncpa [#allocation4], 1 }
 0x242   :  { %479 = vsyncpa [#allocation4 + $0x1], 1 }
 0x243   :  { %480 = vsyncpa [#allocation9], 1 }

</bundles_post_ra>
